<compile_context>
chip_gen: v5e
topology: v5e:2x2
jax: 0.10.0
libtpu: 0.0.40
codegen_flags: <defaults>
</compile_context>

<pallas_src>
import jax
import jax.numpy as jnp
from jax.experimental import pallas as pl
from jax.experimental.pallas import tpu as pltpu


def _round_up(x, m):
    return ((x + m - 1) // m) * m


def _critic_kernel(s_ref, a_ref, w1s_ref, w1a_ref, w2_ref, w3_ref, bias_ref,
                   out_ref):
    s = s_ref[...]                       # [tb, n_states]  (bf16)
    a = a_ref[...]                       # [tb, n_actions] (bf16)

    bias = bias_ref[...]                 # [3, 2H] f32
    b1 = bias[0:1, :]                    # [1, 2H]
    b2 = bias[1:2, :]                    # [1, 2H]
    b3 = bias[2:3, 0:2]                  # [1, 2]

    # Layer 1: concat(state, action) folded into two matmuls on pre-split slabs.
    h = (jnp.dot(s, w1s_ref[...], preferred_element_type=jnp.float32)
         + jnp.dot(a, w1a_ref[...], preferred_element_type=jnp.float32)
         + b1)
    h = jnp.maximum(h, 0.0)

    # Layer 2: block-diagonal fused weight keeps the two Q heads independent.
    h = jnp.dot(h, w2_ref[...], preferred_element_type=jnp.float32) + b2
    h = jnp.maximum(h, 0.0)

    # Layer 3: [2H, 2] -> column 0 = Q1, column 1 = Q2.
    q = jnp.dot(h, w3_ref[...], preferred_element_type=jnp.float32) + b3  # [tb, 2]

    # Lane-dense store: heads on sublanes, batch on lanes.
    out_ref[...] = q.T.astype(out_ref.dtype)                              # [2, tb]


def fuse_critic_params(params, n_states, n_hidden, *, act_dtype=jnp.bfloat16):
    """Pack the 12 per-layer arrays into 5 slabs consumed by the kernel."""
    (w1, b1, w2, b2, w3, b3,             # Q1 head
     v1, c1, v2, c2, v3, c3) = params    # Q2 head
    H = n_hidden
    # The block-diagonal layer-2/3 fusion is only free while 2H fits one MXU
    # tile; beyond that the two heads should be run as separate H x H dots.
    assert 2 * H <= 128, "2*n_hidden must be <= 128 for the fused-head layout"

    W1 = jnp.concatenate([w1, v1], axis=1)             # [d_in, 2H]
    W1_state = W1[:n_states, :].astype(act_dtype)      # pre-split at fuse time
    W1_action = W1[n_states:, :].astype(act_dtype)     # (alignment-proof)
    B1 = jnp.concatenate([b1, c1], axis=1)             # [1, 2H]

    W2 = jnp.zeros((2 * H, 2 * H), jnp.float32)
    W2 = W2.at[:H, :H].set(w2).at[H:, H:].set(v2)      # block-diag
    B2 = jnp.concatenate([b2, c2], axis=1)             # [1, 2H]

    W3 = jnp.zeros((2 * H, 2), jnp.float32)
    W3 = W3.at[:H, 0:1].set(w3).at[H:, 1:2].set(v3)    # [2H, 2]
    B3 = jnp.zeros((1, 2 * H), jnp.float32)
    B3 = B3.at[0, 0].set(b3[0, 0]).at[0, 1].set(c3[0, 0])

    bias_slab = jnp.concatenate([B1, B2, B3], axis=0).astype(jnp.float32)  # [3,2H]
    return W1_state, W1_action, W2, W3, bias_slab


# Per-row work is tiny, so the kernel is step-overhead/HBM bound: use large
# tiles. With lane padding (<128-wide blocks pad to 128 lanes) and bf16
# activations, a 4096-row tile costs only a few MiB of VMEM -> safe on every
# generation (v5e 16 MiB scoped, v6e/v7x 32 MiB scoped, v7x 64 MiB physical).
_DEFAULT_TARGET_TILE = 4096


def _pick_batch_tile(batch, target=_DEFAULT_TARGET_TILE):
    b8 = _round_up(batch, 8)
    if b8 <= 128:
        return b8                        # single grid step, tile == padded batch
    # Multi-step grid: tile must be a multiple of 128 (lane-dense [2, tb] output
    # block), and aim for >= 2 steps so both v7x TensorCores get work.
    half = _round_up(pl.cdiv(b8, 2), 128)
    return max(128, min(target, half))


def critic_forward(state, action, fused_params, *, batch_tile=None,
                   act_dtype=jnp.bfloat16):
    """Equivalent of CriticNetwork.forward: returns (Q1, Q2), each [B, 1] f32."""
    W1s, W1a, W2, W3, bias = fused_params
    B, n_states = state.shape
    n_actions = action.shape[1]

    if batch_tile is None:
        tb = _pick_batch_tile(B)
    elif batch_tile >= _round_up(B, 8):
        tb = _round_up(B, 8)             # one tile covers the whole padded batch
    else:
        tb = _round_up(batch_tile, 128)  # multi-step grids need lane-aligned tb

    b_pad = _round_up(B, tb)
    if b_pad != B:                       # cdiv grid with zero-padded last tile
        state = jnp.pad(state, ((0, b_pad - B), (0, 0)))
        action = jnp.pad(action, ((0, b_pad - B), (0, 0)))

    state = state.astype(act_dtype)
    action = action.astype(act_dtype)
    grid = (b_pad // tb,)

    out = pl.pallas_call(
        _critic_kernel,
        out_shape=jax.ShapeDtypeStruct((2, b_pad), jnp.float32),
        grid=grid,
        in_specs=[
            pl.BlockSpec((tb, n_states), lambda i: (i, 0)),    # state tile
            pl.BlockSpec((tb, n_actions), lambda i: (i, 0)),   # action tile
            pl.BlockSpec(W1s.shape, lambda i: (0, 0)),         # resident weights
            pl.BlockSpec(W1a.shape, lambda i: (0, 0)),
            pl.BlockSpec(W2.shape, lambda i: (0, 0)),
            pl.BlockSpec(W3.shape, lambda i: (0, 0)),
            pl.BlockSpec(bias.shape, lambda i: (0, 0)),
        ],
        out_specs=pl.BlockSpec((2, tb), lambda i: (0, i)),     # lane-dense output
        compiler_params=pltpu.CompilerParams(
            dimension_semantics=("parallel",),
            vmem_limit_bytes=32 * 1024 * 1024),
    )(state, action, W1s, W1a, W2, W3, bias)

    q1 = out[0, :B].reshape(B, 1)
    q2 = out[1, :B].reshape(B, 1)
    return q1, q2


def init_critic_params(key, n_states, n_actions, n_hidden):
    """Deterministic init mimicking nn.Linear's uniform(-1/sqrt(fan_in), +)."""
    d_in = n_states + n_actions
    dims = [(d_in, n_hidden), (n_hidden, n_hidden), (n_hidden, 1)]

    params = []
    for _head in range(2):               # two Q heads
        for (fi, fo) in dims:
            key, kw, kb = jax.random.split(key, 3)
            bound = 1.0 / jnp.sqrt(jnp.float32(fi))
            w = jax.random.uniform(kw, (fi, fo), jnp.float32, -bound, bound)
            b = jax.random.uniform(kb, (1, fo), jnp.float32, -bound, bound)
            params.append(w)
            params.append(b)
    return tuple(params)


if __name__ == "__main__":
    n_states = 24
    n_actions = 8
    n_hidden = 32

    key = jax.random.PRNGKey(0)
    k_state, k_action, k_params = jax.random.split(key, 3)

    params = init_critic_params(k_params, n_states, n_actions, n_hidden)
    fused = fuse_critic_params(params, n_states, n_hidden)

    # Pure-JAX reference of the original module (f32 throughout).
    def ref_head(x, w1, b1, w2, b2, w3, b3):
        h = jnp.maximum(x @ w1 + b1, 0.0)
        h = jnp.maximum(h @ w2 + b2, 0.0)
        return h @ w3 + b3

    # --- small batch (single grid step) -------------------------------------
    B = 8
    state = jax.random.normal(k_state, (B, n_states), jnp.float32)
    action = jax.random.normal(k_action, (B, n_actions), jnp.float32)

    q1, q2 = critic_forward(state, action, fused)
    jax.block_until_ready((q1, q2))

    x = jnp.concatenate([state, action], axis=-1)
    r1 = ref_head(x, *params[0:6])
    r2 = ref_head(x, *params[6:12])
    assert q1.shape == (B, 1) and q2.shape == (B, 1)
    # Loose tolerance: kernel uses bf16 activations (intentional, DMA-bound).
    assert jnp.allclose(q1, r1, atol=2e-2, rtol=2e-2)
    assert jnp.allclose(q2, r2, atol=2e-2, rtol=2e-2)

    # --- awkward batch (exercises cdiv grid + padded last tile) -------------
    B2 = 300
    state2 = jax.random.normal(jax.random.PRNGKey(1), (B2, n_states), jnp.float32)
    action2 = jax.random.normal(jax.random.PRNGKey(2), (B2, n_actions), jnp.float32)

    p1, p2 = critic_forward(state2, action2, fused)
    jax.block_until_ready((p1, p2))

    x2 = jnp.concatenate([state2, action2], axis=-1)
    s1 = ref_head(x2, *params[0:6])
    s2 = ref_head(x2, *params[6:12])
    assert p1.shape == (B2, 1) and p2.shape == (B2, 1)
    assert jnp.allclose(p1, s1, atol=2e-2, rtol=2e-2)
    assert jnp.allclose(p2, s2, atol=2e-2, rtol=2e-2)

    print("KERNEL_OK")
</pallas_src>

<mosaic_0001>
module attributes {stable_mosaic.version = 11 : i64} {
  func.func @_critic_kernel(%arg0: i32, %arg1: memref<8x24xbf16, #tpu.memory_space<vmem>>, %arg2: memref<8x8xbf16, #tpu.memory_space<vmem>>, %arg3: memref<24x64xbf16, #tpu.memory_space<vmem>>, %arg4: memref<8x64xbf16, #tpu.memory_space<vmem>>, %arg5: memref<64x64xf32, #tpu.memory_space<vmem>>, %arg6: memref<64x2xf32, #tpu.memory_space<vmem>>, %arg7: memref<3x64xf32, #tpu.memory_space<vmem>>, %arg8: memref<2x8xf32, #tpu.memory_space<vmem>>) attributes {dimension_semantics = [#tpu.dimension_semantics<parallel>], iteration_bounds = array<i64: 1>, scalar_prefetch = 0 : i64, scratch_operands = 0 : i64, tpu.core_type = #tpu.core_type<tc>, window_params = [{transform_indices = @transform_0, window_bounds = array<i64: 8, 24>}, {transform_indices = @transform_1, window_bounds = array<i64: 8, 8>}, {pipeline_mode = #tpu.pipeline_mode<synchronous>, transform_indices = @transform_2, window_bounds = array<i64: 24, 64>}, {pipeline_mode = #tpu.pipeline_mode<synchronous>, transform_indices = @transform_3, window_bounds = array<i64: 8, 64>}, {pipeline_mode = #tpu.pipeline_mode<synchronous>, transform_indices = @transform_4, window_bounds = array<i64: 64, 64>}, {pipeline_mode = #tpu.pipeline_mode<synchronous>, transform_indices = @transform_5, window_bounds = array<i64: 64, 2>}, {pipeline_mode = #tpu.pipeline_mode<synchronous>, transform_indices = @transform_6, window_bounds = array<i64: 3, 64>}, {transform_indices = @transform_7, window_bounds = array<i64: 2, 8>}]} {
    %c0 = arith.constant 0 : index
    %c0_0 = arith.constant 0 : index
    %0 = vector.load %arg1[%c0, %c0_0] : memref<8x24xbf16, #tpu.memory_space<vmem>>, vector<8x24xbf16>
    %c0_1 = arith.constant 0 : index
    %c0_2 = arith.constant 0 : index
    %1 = vector.load %arg2[%c0_1, %c0_2] : memref<8x8xbf16, #tpu.memory_space<vmem>>, vector<8x8xbf16>
    %c0_3 = arith.constant 0 : index
    %c0_4 = arith.constant 0 : index
    %2 = vector.load %arg7[%c0_3, %c0_4] : memref<3x64xf32, #tpu.memory_space<vmem>>, vector<3x64xf32>
    %3 = vector.extract_strided_slice %2 {offsets = [0, 0], sizes = [1, 64], strides = [1, 1]} : vector<3x64xf32> to vector<1x64xf32>
    %4 = vector.extract_strided_slice %2 {offsets = [1, 0], sizes = [1, 64], strides = [1, 1]} : vector<3x64xf32> to vector<1x64xf32>
    %5 = vector.extract_strided_slice %2 {offsets = [2, 0], sizes = [1, 2], strides = [1, 1]} : vector<3x64xf32> to vector<1x2xf32>
    %c0_5 = arith.constant 0 : index
    %c0_6 = arith.constant 0 : index
    %6 = vector.load %arg3[%c0_5, %c0_6] : memref<24x64xbf16, #tpu.memory_space<vmem>>, vector<24x64xbf16>
    %cst = arith.constant dense<0.000000e+00> : vector<8x64xf32>
    %7 = tpu.matmul %0, %6, %cst {dimension_numbers = #tpu.dot_dimension_numbers<[1], [0], [0], [1], [0, 0, 1, 1], [], []>} : vector<8x24xbf16>, vector<24x64xbf16>, vector<8x64xf32> -> vector<8x64xf32>
    %c0_7 = arith.constant 0 : index
    %c0_8 = arith.constant 0 : index
    %8 = vector.load %arg4[%c0_7, %c0_8] : memref<8x64xbf16, #tpu.memory_space<vmem>>, vector<8x64xbf16>
    %cst_9 = arith.constant dense<0.000000e+00> : vector<8x64xf32>
    %9 = tpu.matmul %1, %8, %cst_9 {dimension_numbers = #tpu.dot_dimension_numbers<[1], [0], [0], [1], [0, 0, 1, 1], [], []>} : vector<8x8xbf16>, vector<8x64xbf16>, vector<8x64xf32> -> vector<8x64xf32>
    %10 = arith.addf %7, %9 : vector<8x64xf32>
    %11 = vector.broadcast %3 : vector<1x64xf32> to vector<8x64xf32>
    %12 = arith.addf %10, %11 : vector<8x64xf32>
    %cst_10 = arith.constant 0.000000e+00 : f32
    %13 = vector.broadcast %cst_10 : f32 to vector<8x64xf32>
    %14 = arith.maximumf %12, %13 : vector<8x64xf32>
    %c0_11 = arith.constant 0 : index
    %c0_12 = arith.constant 0 : index
    %15 = vector.load %arg5[%c0_11, %c0_12] : memref<64x64xf32, #tpu.memory_space<vmem>>, vector<64x64xf32>
    %cst_13 = arith.constant dense<0.000000e+00> : vector<8x64xf32>
    %16 = tpu.matmul %14, %15, %cst_13 {dimension_numbers = #tpu.dot_dimension_numbers<[1], [0], [0], [1], [0, 0, 1, 1], [], []>} : vector<8x64xf32>, vector<64x64xf32>, vector<8x64xf32> -> vector<8x64xf32>
    %17 = vector.broadcast %4 : vector<1x64xf32> to vector<8x64xf32>
    %18 = arith.addf %16, %17 : vector<8x64xf32>
    %cst_14 = arith.constant 0.000000e+00 : f32
    %19 = vector.broadcast %cst_14 : f32 to vector<8x64xf32>
    %20 = arith.maximumf %18, %19 : vector<8x64xf32>
    %c0_15 = arith.constant 0 : index
    %c0_16 = arith.constant 0 : index
    %21 = vector.load %arg6[%c0_15, %c0_16] : memref<64x2xf32, #tpu.memory_space<vmem>>, vector<64x2xf32>
    %cst_17 = arith.constant dense<0.000000e+00> : vector<8x2xf32>
    %22 = tpu.matmul %20, %21, %cst_17 {dimension_numbers = #tpu.dot_dimension_numbers<[1], [0], [0], [1], [0, 0, 1, 1], [], []>} : vector<8x64xf32>, vector<64x2xf32>, vector<8x2xf32> -> vector<8x2xf32>
    %23 = vector.broadcast %5 : vector<1x2xf32> to vector<8x2xf32>
    %24 = arith.addf %22, %23 : vector<8x2xf32>
    %25 = tpu.transpose %24, [1, 0] : vector<8x2xf32> -> vector<2x8xf32>
    %c0_18 = arith.constant 0 : index
    %c0_19 = arith.constant 0 : index
    %26 = vector.load %arg8[%c0_18, %c0_19] : memref<2x8xf32, #tpu.memory_space<vmem>>, vector<2x8xf32>
    tpu.vector_store %arg8[%c0_18, %c0_19], %25 {strides = array<i32>} : memref<2x8xf32, #tpu.memory_space<vmem>>, vector<2x8xf32>,
    return
  }
  func.func @transform_0(%arg0: i32) -> (i32, i32) {
    %c0_i32 = arith.constant 0 : i32
    %c0_i32_0 = arith.constant 0 : i32
    return %arg0, %c0_i32 : i32, i32
  }
  func.func @transform_1(%arg0: i32) -> (i32, i32) {
    %c0_i32 = arith.constant 0 : i32
    %c0_i32_0 = arith.constant 0 : i32
    return %arg0, %c0_i32 : i32, i32
  }
  func.func @transform_2(%arg0: i32) -> (i32, i32) {
    %c0_i32 = arith.constant 0 : i32
    %c0_i32_0 = arith.constant 0 : i32
    %c0_i32_1 = arith.constant 0 : i32
    return %c0_i32, %c0_i32_0 : i32, i32
  }
  func.func @transform_3(%arg0: i32) -> (i32, i32) {
    %c0_i32 = arith.constant 0 : i32
    %c0_i32_0 = arith.constant 0 : i32
    %c0_i32_1 = arith.constant 0 : i32
    return %c0_i32, %c0_i32_0 : i32, i32
  }
  func.func @transform_4(%arg0: i32) -> (i32, i32) {
    %c0_i32 = arith.constant 0 : i32
    %c0_i32_0 = arith.constant 0 : i32
    %c0_i32_1 = arith.constant 0 : i32
    return %c0_i32, %c0_i32_0 : i32, i32
  }
  func.func @transform_5(%arg0: i32) -> (i32, i32) {
    %c0_i32 = arith.constant 0 : i32
    %c0_i32_0 = arith.constant 0 : i32
    %c0_i32_1 = arith.constant 0 : i32
    return %c0_i32, %c0_i32_0 : i32, i32
  }
  func.func @transform_6(%arg0: i32) -> (i32, i32) {
    %c0_i32 = arith.constant 0 : i32
    %c0_i32_0 = arith.constant 0 : i32
    %c0_i32_1 = arith.constant 0 : i32
    return %c0_i32, %c0_i32_0 : i32, i32
  }
  func.func @transform_7(%arg0: i32) -> (i32, i32) {
    %c0_i32 = arith.constant 0 : i32
    %c0_i32_0 = arith.constant 0 : i32
    return %c0_i32, %arg0 : i32, i32
  }
}

</mosaic_0001>

<bundles_post_ra>
// kernel: tpu_custom_call.1
= control target key start
LH: loop header
LB: loop body
LE: loop exit
PB: predicated region body
PF: predicated region fallthrough
CT: control target
= control target key end

     0   :  { %12 = vsyncpa [#allocation3], 0  ;;  %s561_s0 = inlined_call_operand.hbm [shape: bf16[8,24], index: 0, kind: input, shape index: {}]   ;;  %s562_s1 = inlined_call_operand.hbm [shape: bf16[8,8], index: 1, kind: input, shape index: {}]   ;;  %s563_s2 = inlined_call_operand.hbm [shape: bf16[24,64], index: 2, kind: input, shape index: {}]   ;;  %s564_s3 = inlined_call_operand.hbm [shape: bf16[8,64], index: 3, kind: input, shape index: {}]   ;;  %s565_s4 = inlined_call_operand.vmem [shape: f32[64,64], index: 4, kind: input, shape index: {}]   ;;  %s566_s5 = inlined_call_operand.vmem [shape: f32[64,2], index: 5, kind: input, shape index: {}]   ;;  %s567_s6 = inlined_call_operand.hbm [shape: f32[3,64], index: 6, kind: input, shape index: {}]   ;;  %s568_s7 = inlined_call_operand.hbm [shape: f32[2,8], index: 7, kind: output, shape index: {}]  }
   0x1   :  { %13 = vsyncpa [#allocation6], 0 }
   0x2   :  { %14 = vsyncpa [#allocation9], 0  ;;  %s32_s26 = sshll.u32 %s562_s1, 4  ;;  %s33_s26 = int_to_ptr.hbm [resolvable:$true] %s32_s26 }
   0x3   :  { %15 = vsyncpa [#allocation4], 0  ;;  %s447_s27 = smov [#allocation5]   ;;  %s56_s8 = sshll.u32 %s564_s3, 4  ;;  %s57_s8 = int_to_ptr.hbm [resolvable:$true] %s56_s8 }
   0x4   :  { %s34_s28 = sshll.u32 %s447_s27, 4  ;;  %s448_s9 = smov [#allocation8]   ;;  %s35_s28 = int_to_ptr.vmem [resolvable:$true] %s34_s28 }
   0x5   :  { %37 = dma.hbm_to_vmem [thread:$0]  %s33_s26, 64, %s35_s28, [#allocation6]  }
   0x6   :  { %s58_s10 = sshll.u32 %s448_s9, 4  ;;  %s21_s13 = sshll.u32 %s561_s0, 4  ;;  %s59_s10 = int_to_ptr.vmem [resolvable:$true] %s58_s10  ;;  %s22_s13 = int_to_ptr.hbm [resolvable:$true] %s21_s13 }
   0x7   :  { %61 = dma.hbm_to_vmem [thread:$0]  %s57_s8, 64, %s59_s10, [#allocation9]  }
   0x8   :  { %s42_s15 = sshll.u32 %s563_s2, 4  ;;  %s449_s16 = smov [#allocation2]   ;;  %s43_s15 = int_to_ptr.hbm [resolvable:$true] %s42_s15 }
   0x9   :  { %s23_s17 = sshll.u32 %s449_s16, 4  ;;  %s450_s3 = smov [#allocation7]   ;;  %s24_s17 = int_to_ptr.vmem [resolvable:$true] %s23_s17 }
   0xa   :  { %26 = dma.hbm_to_vmem [thread:$0]  %s22_s13, 64, %s24_s17, [#allocation3]  }
   0xb   :  { %s44_s18 = sshll.u32 %s450_s3, 4  ;;  %s451_s19 = smov 64   ;;  %s45_s18 = int_to_ptr.vmem [resolvable:$true] %s44_s18 }
   0xc   :  { %s452_s20 = smov 4   ;;  %s71_s22 = sshll.u32 %s567_s6, 4  ;;  %s72_s22 = int_to_ptr.hbm [resolvable:$true] %s71_s22 }
   0xd   :  { %50 = dma.hbm_to_vmem [thread:$0]  %s43_s15, 192, %s45_s18, [#allocation6], %s451_s19, %s451_s19, %s452_s20  }
   0xe   :  { %s453_s23 = smov [#allocation10]  }
   0xf   :  { %s73_s24 = sshll.u32 %s453_s23, 4  ;;  %s74_s24 = int_to_ptr.vmem [resolvable:$true] %s73_s24 }
  0x10   :  { %76 = dma.hbm_to_vmem [thread:$0]  %s72_s22, 64, %s74_s24, [#allocation9]  }
  0x11   :  { %439 = dma.done.wait [#allocation3], 64  }
  0x12   :  { %440 = vsyncadd [#allocation3], 4294967232 }
  0x13   :  { %441 = dma.done.wait [#allocation6], 256  }
  0x14   :  { %442 = vsyncadd [#allocation6], 4294967040 }
  0x15   :  { %443 = dma.done.wait [#allocation9], 128  }
  0x16   :  { %444 = vsyncadd [#allocation9], 4294967168  ;;  %vm109_vm0 = vcmask 1043456   ;;  %v104_v0 = vld [vmem:[#allocation8] sm:$0xf]  ;;  %vm105_vm1 = vcmask 64512  }
  0x17   :  { %v103_v1 = vld [vmem:[#allocation7 + $0x8] sm:$0xf]  ;;  %v111_v2 = vsel %vm109_vm0, %v104_v0, 0  ;;  %v99_v4 = vld [vmem:[#allocation5] sm:$0xf]  ;;  %v285_v7 = vld [vmem:[#allocation7] sm:$0xff] }
  0x18   :  { %v131_v3 = vunpack.c.l.b16 %v103_v1  ;;  %120 = vmatpush.bf16.msra.mxu0 %v111_v2  ;;  %v98_v8 = vld [vmem:[#allocation2] sm:$0xf]  ;;  %vm135_vm2 = vcmask 195584   ;;  %v165_v9 = vld [vmem:[%s565_s4 + $0x38] sm:$0xff]  ;;  %v164_v10 = vld [vmem:[%s565_s4 + $0x30] sm:$0xff]  ;;  %vm167_vm3 = vcmask 523264  }
  0x19   :  { %179 = vmatpush.msra.mxu2 %v165_v9  ;;  %v163_v11 = vld [vmem:[%s565_s4 + $0x28] sm:$0xff]  ;;  %v162_v12 = vld [vmem:[%s565_s4 + $0x20] sm:$0xff]  ;;  %v161_v13 = vld [vmem:[%s565_s4 + $0x18] sm:$0xff]  ;;  %s454_s26 = smov [#allocation11]   ;;  %s265_s30 = sshll.u32 %s568_s7, 4  ;;  %vm256_vm4 = vcmask 58368   ;;  %s266_s30 = int_to_ptr.hbm [resolvable:$true] %s265_s30 }
  0x1a   :  { %v133_v5 = vpack.c.b16 %v131_v3, %v131_v3  ;;  %v160_v14 = vld [vmem:[%s565_s4 + $0x10] sm:$0xff]  ;;  %v159_v15 = vld [vmem:[%s565_s4 + $0x8] sm:$0xff]  ;;  %v158_v16 = vld [vmem:[%s565_s4] sm:$0xff]  ;;  %s263_s27 = sshll.u32 %s454_s26, 4  ;;  %s264_s27 = int_to_ptr.vmem [resolvable:$true] %s263_s27 }
  0x1b   :  { %277 = vmatmul.msk.bf16.vlgmr.msra.gmra.mxu0 %vm105_vm1, %v99_v4  ;;  %180 = vmatpush.msra.mxu2 %v164_v10  ;;  %v199_v17 = vld [vmem:[%s566_s5 + $0x38] sm:$0xff]  ;;  %v198_v18 = vld [vmem:[%s566_s5 + $0x30] sm:$0xff]  ;;  %v197_v19 = vld [vmem:[%s566_s5 + $0x28] sm:$0xff] }
  0x1c   :  { %v140_v6 = vsel %vm109_vm0, %v133_v5, 0  ;;  %212 = vmatpush.msra.mxu3 %v199_v17  ;;  %v196_v20 = vld [vmem:[%s566_s5 + $0x20] sm:$0xff]  ;;  %v195_v21 = vld [vmem:[%s566_s5 + $0x18] sm:$0xff]  ;;  %v194_v31 = vld [vmem:[%s566_s5 + $0x10] sm:$0xff] }
  0x1d   :  { %148 = vmatpush.bf16.msra.mxu1 %v140_v6  ;;  %181 = vmatpush.msra.mxu2 %v163_v11  ;;  %v100_v23 = vld [vmem:[#allocation10] sm:$0x7]  ;;  %v193_v32 = vld [vmem:[%s566_s5 + $0x8] sm:$0xff]  ;;  %v192_v33 = vld [vmem:[%s566_s5] sm:$0xff] }
  0x1e   :  { %213 = vmatpush.msra.mxu3 %v198_v18  ;;  %v155_v24 = vperm.slane %v100_v23, 0  ;;  %v166_v34 = vperm.slane %v100_v23, 1  ;;  %v200_v38 = vperm.slane %v100_v23, 2 }
  0x1f   :  { %182 = vmatpush.msra.mxu2 %v162_v12 }
  0x20   :  { %214 = vmatpush.msra.mxu3 %v197_v19 }
  0x21   :  { %149 = vmatpush.bf16.msra.mxu1 %v285_v7  ;;  %183 = vmatpush.msra.mxu2 %v161_v13 }
  0x22   :  { %215 = vmatpush.msra.mxu3 %v196_v20 }
  0x23   :  { %184 = vmatpush.msra.mxu2 %v160_v14 }
  0x24   :  { %282 = vmatmul.msk.bf16.vlgmr.msra.gmra.mxu1 %vm135_vm2, %v98_v8  ;;  %216 = vmatpush.msra.mxu3 %v195_v21 }
  0x25   :  { %185 = vmatpush.msra.mxu2 %v159_v15 }
  0x26   :  { %217 = vmatpush.msra.mxu3 %v194_v31 }
  0x27   :  { %186 = vmatpush.msra.mxu2 %v158_v16 }
  0x28   :  { %218 = vmatpush.msra.mxu3 %v193_v32 }
  0x2a   :  { %219 = vmatpush.msra.mxu3 %v192_v33 }
  0x98   :  { %v122_v22 = vpop.f32.mrf.mxu0 }
  0xa0   :  { %v124_v25 = vpop.f32.mrf.mxu0 }
  0xa1   :  { %v151_v26 = vpop.f32.mrf.mxu1 }
  0xa2   :  { %v152_v27 = vadd.f32 %v151_v26, %v122_v22 }
  0xa4   :  { %v156_v28 = vadd.f32 %v155_v24, %v152_v27 }
  0xa6   :  { %v157_v29 = vmax.f32 %v156_v28, 0.0 }
  0xa8   :  { %283 = vmatmul.msk.f32.vlgmr.msra.gmra.mxu2 %vm167_vm3, %v157_v29 }
  0xa9   :  { %v153_v30 = vpop.f32.mrf.mxu1 }
 0x12b   :  { %v188_v35 = vpop.f32.mrf.mxu2 }
 0x12c   :  { %v189_v36 = vadd.f32 %v188_v35, %v166_v34 }
 0x12e   :  { %v191_v37 = vmax.f32 %v189_v36, 0.0 }
 0x130   :  { %284 = vmatmul.msk.f32.vlgmr.msra.gmra.mxu3 %vm167_vm3, %v191_v37 }
 0x1b3   :  { %v221_v39 = vpop.f32.mrf.mxu3 }
 0x1b4   :  { %v222_v40 = vadd.f32 %v221_v39, %v200_v38 }
 0x1b6   :  { %224 = vxpose.xlu0.b32.start.end [1/1] (short) (narrow) %v222_v40, 8 }
 0x25a   :  { %v240_v41 = vpop.trf.xlu0 }
 0x25b   :  { %257 = vst.msk [vmem:[#allocation11] sm:$0x3] %vm256_vm4, %v240_v41 }
 0x25c   :  { %268 = dma.vmem_to_hbm [thread:$0]  %s264_s27, 32, %s266_s30, [#allocation4]  }
 0x25d   :  { %445 = dma.done.wait [#allocation4], 32  }
 0x25e   :  { %446 = vsyncadd [#allocation4], 4294967264 }
 0x25f   :  { %273 = vsyncpa [#allocation3], 1 }
 0x260   :  { %274 = vsyncpa [#allocation6], 1 }
 0x261   :  { %275 = vsyncpa [#allocation9], 1 }
 0x262   :  { %276 = vsyncpa [#allocation4], 1 }

</bundles_post_ra>
